<compile_context>
chip_gen: v7x
topology: tpu7x:2x2x1
jax: 0.10.0
libtpu: 0.0.40
codegen_flags: <defaults>
</compile_context>

<pallas_src>
import jax
import jax.numpy as jnp
from jax.experimental import pallas as pl
from jax.experimental.pallas import tpu as pltpu


def _round_up(x: int, m: int) -> int:
    return ((x + m - 1) // m) * m


_VMEM_TILE_BUDGET = 24 << 20  # bytes of tile footprint; v7x-safe (64 MiB VMEM/TC)


def _pick_tn(Np: int) -> int:
    for c in (512, 256, 128):
        if c <= Np and Np % c == 0:
            return c
    return Np


def _pick_tm(M: int) -> int:
    if M < 128:
        return _round_up(max(M, 8), 8)
    if M >= 1024 and M % 1024 == 0:
        return 1024
    if M >= 512 and M % 512 == 0:
        return 512
    cands = [t for t in (512, 256, 128) if t <= _round_up(M, 128)]
    # minimize M padding; on ties prefer the larger tile (amortizes per-step cost)
    return min(cands, key=lambda t: ((-M) % t, -t))


def _shrink_for_vmem(tm: int, tn: int, Dp: int, in_item: int, out_item: int,
                     budget: int = _VMEM_TILE_BUDGET) -> int:
    def footprint(t):
        # double-buffered x & w tiles + double-buffered output tile
        return 2 * (t * Dp + Dp * tn) * in_item + 2 * t * tn * out_item

    while tm > 128 and footprint(tm) > budget:
        tm = max(128, tm // 2)
    # TODO(synk): if footprint(128) still exceeds the budget (huge model_dim),
    # fall back to a K-tiled accumulator variant instead of full-K blocks.
    return tm


def _proj_kernel(x_ref, w_ref, o_ref):
    # Full-K dot per grid step: no accumulator scratch / pl.when needed and
    # Mosaic can accumulate inside the MXU (MRB on v7x).
    o_ref[...] = jnp.dot(
        x_ref[...], w_ref[...], preferred_element_type=jnp.float32
    ).astype(o_ref.dtype)


def _linear_pallas(x2d, w, *, compute_dtype=jnp.bfloat16, out_dtype=None):
    """x2d: (M, D); w: (D, N) (transposed nn.Linear weight).  Returns (M, N)."""
    M, D = x2d.shape
    Dw, N = w.shape
    assert D == Dw, (D, Dw)
    if out_dtype is None:
        out_dtype = x2d.dtype

    cdt = jnp.dtype(compute_dtype) if compute_dtype is not None else jnp.dtype(x2d.dtype)
    in_item = cdt.itemsize
    out_item = jnp.dtype(out_dtype).itemsize

    # Lane-dense padded problem dims (last dims multiples of 128, M mult. of tm).
    Dp = _round_up(D, 128)
    Np = _round_up(N, 128)
    tn = _pick_tn(Np)
    tm = _pick_tm(M)
    tm = _shrink_for_vmem(tm, tn, Dp, in_item, out_item)
    Mp = _round_up(M, tm)

    xc = x2d if compute_dtype is None else x2d.astype(compute_dtype)
    wc = w if compute_dtype is None else w.astype(compute_dtype)
    # Pad only when the real dims are not already aligned (no extra HBM round
    # trip for aligned model dims).  Zero padding along K/N is exact.
    if (Mp, Dp) != (M, D):
        xc = jnp.pad(xc, ((0, Mp - M), (0, Dp - D)))
    if (Dp, Np) != (D, N):
        wc = jnp.pad(wc, ((0, Dp - D), (0, Np - N)))

    ni, nj = Mp // tm, Np // tn
    grid = (ni, nj)  # M tiles leading -> even dual-TC split on v7x

    in_specs = [
        # activations: stream M tiles, full K
        pl.BlockSpec((tm, Dp), lambda i, j: (i, 0)),
        # weights: constant block index across the M sweep; with the common
        # nj == 1 case it is constant for the whole grid -> DMA'd once,
        # genuinely VMEM-resident.
        pl.BlockSpec((Dp, tn), lambda i, j: (0, j)),
    ]
    out_specs = pl.BlockSpec((tm, tn), lambda i, j: (i, j))

    w_bytes = (Dp * Np if nj == 1 else ni * Dp * Np) * in_item
    cost = pl.CostEstimate(
        flops=2 * Mp * Dp * Np,
        transcendentals=0,
        bytes_accessed=Mp * Dp * in_item + w_bytes + Mp * Np * out_item,
    )

    footprint = 2 * (tm * Dp + Dp * tn) * in_item + 2 * tm * tn * out_item
    vmem_limit = int(min(max(footprint * 5 // 4, 4 << 20), 32 << 20))

    out = pl.pallas_call(
        _proj_kernel,
        grid=grid,
        in_specs=in_specs,
        out_specs=out_specs,
        out_shape=jax.ShapeDtypeStruct((Mp, Np), out_dtype),
        compiler_params=pltpu.CompilerParams(
            dimension_semantics=("parallel", "parallel"),
            vmem_limit_bytes=vmem_limit,
        ),
        cost_estimate=cost,
    )(xc, wc)

    if (Mp, Np) != (M, N):
        out = out[:M, :N]
    return out


def attention_projection(q, k, v, wq_t, wk_t, wv_t, *, compute_dtype=jnp.bfloat16):
    """q/k/v: (B, S, model_dim); w*_t: (model_dim, dk|dv) (nn.Linear weight.T).

    Matches AttentionProjection.forward: (q @ Wq.T, k @ Wk.T, v @ Wv.T) with
    bias=False.  MXU operands are cast to `compute_dtype` (bf16 by default);
    accumulation stays f32; outputs keep the input dtype.
    """
    B, S, D = q.shape
    dk, dv = wq_t.shape[1], wv_t.shape[1]
    M = B * S

    if q is k and k is v:
        # Self-attention fast path: fused QKV -> one activation read and a
        # single padded (D, 2*dk+dv) weight instead of three padded matmuls.
        w_all = jnp.concatenate([wq_t, wk_t, wv_t], axis=1)
        o = _linear_pallas(q.reshape(M, D), w_all,
                           compute_dtype=compute_dtype, out_dtype=q.dtype)
        oq, ok, ov = o[:, :dk], o[:, dk:2 * dk], o[:, 2 * dk:]
    else:
        oq = _linear_pallas(q.reshape(M, D), wq_t,
                            compute_dtype=compute_dtype, out_dtype=q.dtype)
        ok = _linear_pallas(k.reshape(M, D), wk_t,
                            compute_dtype=compute_dtype, out_dtype=k.dtype)
        ov = _linear_pallas(v.reshape(M, D), wv_t,
                            compute_dtype=compute_dtype, out_dtype=v.dtype)

    return (oq.reshape(B, S, dk), ok.reshape(B, S, dk), ov.reshape(B, S, dv))


if __name__ == "__main__":
    # Small, module-consistent shapes.
    B, S = 2, 8
    model_dim, dk, dv = 32, 16, 16

    key = jax.random.PRNGKey(0)
    kq, kk_, kv_, kwq, kwk, kwv = jax.random.split(key, 6)

    q = jax.random.normal(kq, (B, S, model_dim), dtype=jnp.float32)
    k = jax.random.normal(kk_, (B, S, model_dim), dtype=jnp.float32)
    v = jax.random.normal(kv_, (B, S, model_dim), dtype=jnp.float32)

    # Parameter layout mirrors nn.Linear(model_dim, out, bias=False):
    # PyTorch weight is (out, in); we keep the transposed (in, out) layout.
    scale = 1.0 / jnp.sqrt(jnp.float32(model_dim))
    wq_t = jax.random.uniform(kwq, (model_dim, dk), jnp.float32, -1.0, 1.0) * scale
    wk_t = jax.random.uniform(kwk, (model_dim, dk), jnp.float32, -1.0, 1.0) * scale
    wv_t = jax.random.uniform(kwv, (model_dim, dv), jnp.float32, -1.0, 1.0) * scale

    out_q, out_k, out_v = attention_projection(q, k, v, wq_t, wk_t, wv_t)
    jax.block_until_ready((out_q, out_k, out_v))

    # Reference (same semantics as nn.Linear(bias=False)).  bf16 MXU operands
    # with f32 accumulation -> relaxed tolerance vs the f32 reference.
    ref_q, ref_k, ref_v = q @ wq_t, k @ wk_t, v @ wv_t
    tol = dict(atol=5e-2, rtol=5e-2)
    assert out_q.shape == (B, S, dk) and out_k.shape == (B, S, dk) and out_v.shape == (B, S, dv)
    assert jnp.allclose(out_q, ref_q, **tol)
    assert jnp.allclose(out_k, ref_k, **tol)
    assert jnp.allclose(out_v, ref_v, **tol)

    # Also exercise the fused self-attention fast path (same array for q/k/v).
    sq, sk, sv = attention_projection(q, q, q, wq_t, wk_t, wv_t)
    jax.block_until_ready((sq, sk, sv))
    assert jnp.allclose(sq, q @ wq_t, **tol)
    assert jnp.allclose(sk, q @ wk_t, **tol)
    assert jnp.allclose(sv, q @ wv_t, **tol)

    print("KERNEL_OK")
</pallas_src>

<mosaic_0001>
module attributes {stable_mosaic.version = 11 : i64} {
  func.func @_proj_kernel(%arg0: i32, %arg1: i32, %arg2: memref<16x128xbf16, #tpu.memory_space<vmem>>, %arg3: memref<128x128xbf16, #tpu.memory_space<vmem>>, %arg4: memref<16x128xf32, #tpu.memory_space<vmem>>) attributes {dimension_semantics = [#tpu.dimension_semantics<parallel>, #tpu.dimension_semantics<parallel>], iteration_bounds = array<i64: 1, 1>, scalar_prefetch = 0 : i64, scratch_operands = 0 : i64, tpu.core_type = #tpu.core_type<tc>, window_params = [{transform_indices = @transform_0, window_bounds = array<i64: 16, 128>}, {transform_indices = @transform_1, window_bounds = array<i64: 128, 128>}, {transform_indices = @transform_2, window_bounds = array<i64: 16, 128>}]} {
    %c0 = arith.constant 0 : index
    %c0_0 = arith.constant 0 : index
    %0 = vector.load %arg2[%c0, %c0_0] : memref<16x128xbf16, #tpu.memory_space<vmem>>, vector<16x128xbf16>
    %c0_1 = arith.constant 0 : index
    %c0_2 = arith.constant 0 : index
    %1 = vector.load %arg3[%c0_1, %c0_2] : memref<128x128xbf16, #tpu.memory_space<vmem>>, vector<128x128xbf16>
    %cst = arith.constant dense<0.000000e+00> : vector<16x128xf32>
    %2 = tpu.matmul %0, %1, %cst {dimension_numbers = #tpu.dot_dimension_numbers<[1], [0], [0], [1], [0, 0, 1, 1], [], []>} : vector<16x128xbf16>, vector<128x128xbf16>, vector<16x128xf32> -> vector<16x128xf32>
    %c0_3 = arith.constant 0 : index
    %c0_4 = arith.constant 0 : index
    %3 = vector.load %arg4[%c0_3, %c0_4] : memref<16x128xf32, #tpu.memory_space<vmem>>, vector<16x128xf32>
    tpu.vector_store %arg4[%c0_3, %c0_4], %2 {strides = array<i32>} : memref<16x128xf32, #tpu.memory_space<vmem>>, vector<16x128xf32>,
    return
  }
  func.func @transform_0(%arg0: i32, %arg1: i32) -> (i32, i32) {
    %c0_i32 = arith.constant 0 : i32
    %c0_i32_0 = arith.constant 0 : i32
    return %arg0, %c0_i32 : i32, i32
  }
  func.func @transform_1(%arg0: i32, %arg1: i32) -> (i32, i32) {
    %c0_i32 = arith.constant 0 : i32
    %c0_i32_0 = arith.constant 0 : i32
    return %c0_i32, %arg1 : i32, i32
  }
  func.func @transform_2(%arg0: i32, %arg1: i32) -> (i32, i32) {
    %c0_i32 = arith.constant 0 : i32
    return %arg0, %arg1 : i32, i32
  }
}

</mosaic_0001>

<bundles_post_ra>
// kernel: tpu_custom_call.1
= control target key start
LH: loop header
LB: loop body
LE: loop exit
PB: predicated region body
PF: predicated region fallthrough
CT: control target
= control target key end

     0   :  { %7 = vsyncpa [#allocation3], 0  ;;  %s362_s0 = inlined_call_operand.hbm [shape: bf16[16,128], index: 0, kind: input, shape index: {}]   ;;  %s363_s1 = inlined_call_operand.hbm [shape: bf16[128,128], index: 1, kind: input, shape index: {}]   ;;  %s364_s2 = inlined_call_operand.hbm [shape: f32[16,128], index: 2, kind: output, shape index: {}]  }
   0x1   :  { %8 = vsyncpa [#allocation6], 0 }
   0x2   :  { %9 = vsyncpa [#allocation4], 0  ;;  %s302_s9 = smov [#allocation2]   ;;  %s230_s13 = scalar_lea.hbm %s362_s0, 128 }
   0x3   :  { %s15_s10 = sshll.u32 %s302_s9, 4  ;;  %p231_p0 = scmp.ne.s32.totalorder %s362_s0, %s230_s13  ;;  %s16_s10 = int_to_ptr.vmem [resolvable:$true] %s15_s10 }
   0x4   :  { %p234_p1 = scmp.lt.u32.totalorder %s230_s13, %s362_s0 }
   0x6   :  { %p236_p2 = pnand %p234_p1, %p231_p0 }
   0x8   :  { %239 = shalt.err (!%p236_p2)
}
   0x9   :  { %s240_s18 = scalar_lea.vmem %s16_s10, 128  ;;  %p245_p4 = scmp.lt.s32.totalorder %s16_s10, %s16_s10 }
   0xa   :  { %p241_p3 = scmp.ne.s32.totalorder %s16_s10, %s240_s18  ;;  %p246_p5 = scmp.lt.s32.totalorder %s240_s18, %s240_s18 }
   0xc   :  { %p247_p6 = por %p246_p5, %p245_p4 }
   0xe   :  { %p248_p7 = pnand %p247_p6, %p241_p3 }
  0x10   :  { %251 = shalt.err (!%p248_p7)
}
  0x11   :  { %s303_s19 = smov 64   ;;  %s304_s20 = smov 4  }
  0x12   :  { %21 = dma.hbm_to_vmem [thread:$0]  %s362_s0, 128, %s16_s10, [#allocation3], %s303_s19, %s303_s19, %s304_s20  }
  0x13   :  { %s305_s23 = smov [#allocation5]   ;;  %s252_s27 = scalar_lea.hbm %s363_s1, 1024 }
  0x14   :  { %s27_s24 = sshll.u32 %s305_s23, 4  ;;  %p253_p8 = scmp.ne.s32.totalorder %s363_s1, %s252_s27  ;;  %s28_s24 = int_to_ptr.vmem [resolvable:$true] %s27_s24 }
  0x15   :  { %p256_p9 = scmp.lt.u32.totalorder %s252_s27, %s363_s1 }
  0x17   :  { %p258_p10 = pnand %p256_p9, %p253_p8 }
  0x19   :  { %261 = shalt.err (!%p258_p10)
}
  0x1a   :  { %s262_s4 = scalar_lea.vmem %s28_s24, 1024  ;;  %p267_p12 = scmp.lt.s32.totalorder %s28_s24, %s28_s24 }
  0x1b   :  { %p263_p11 = scmp.ne.s32.totalorder %s28_s24, %s262_s4  ;;  %p268_p13 = scmp.lt.s32.totalorder %s262_s4, %s262_s4 }
  0x1d   :  { %p269_p0 = por %p268_p13, %p267_p12 }
  0x1f   :  { %p270_p1 = pnand %p269_p0, %p263_p11 }
  0x21   :  { %273 = shalt.err (!%p270_p1)
}
  0x22   :  { %33 = dma.hbm_to_vmem [thread:$0]  %s363_s1, 1024, %s28_s24, [#allocation6], %s303_s19, %s303_s19, %s304_s20  }
  0x23   :  { %296 = dma.done.wait [#allocation3], 128  }
  0x24   :  { %297 = vsyncadd [#allocation3], 4294967168 }
  0x25   :  { %298 = dma.done.wait [#allocation6], 1024  }
  0x26   :  { %299 = vsyncadd [#allocation6], 4294966272  ;;  %v306_v0 = vmov 0.0   ;;  %vm307_vm0 = vmmov 0   ;;  %v221_v1 = vld [vmem:[#allocation5] sm:$0xff]   ;;  %v222_v2 = vld [vmem:[#allocation5 + $0x8] sm:$0xff]  }
  0x27   :  { %192 = vmatprep.subr.bf16.mxu0 %v306_v0  ;;  %208 = vmatprep.mubr.msk.bf16.mxu0 %vm307_vm0, %v306_v0  ;;  %v223_v3 = vld [vmem:[#allocation5 + $0x10] sm:$0xff]   ;;  %v224_v4 = vld [vmem:[#allocation5 + $0x18] sm:$0xff]   ;;  %v225_v5 = vld [vmem:[#allocation5 + $0x20] sm:$0xff]   ;;  %s308_s1 = smov [#allocation7]  }
  0x28   :  { %193 = vmatpush3.bf16.msra.mxu0 %v221_v1  ;;  %v226_v6 = vld [vmem:[#allocation5 + $0x28] sm:$0xff]   ;;  %v227_v7 = vld [vmem:[#allocation5 + $0x30] sm:$0xff]   ;;  %v228_v8 = vld [vmem:[#allocation5 + $0x38] sm:$0xff]   ;;  %s161_s6 = sshll.u32 %s308_s1, 4  ;;  %s162_s6 = int_to_ptr.vmem [resolvable:$true] %s161_s6 }
  0x29   :  { %194 = vmatprep.subr.bf16.mxu0 %v306_v0  ;;  %v229_v9 = vld [vmem:[#allocation2] sm:$0xff]   ;;  %s274_s7 = scalar_lea.vmem %s162_s6, 256  ;;  %p279_p3 = scmp.lt.s32.totalorder %s162_s6, %s162_s6 }
  0x2a   :  { %p275_p2 = scmp.ne.s32.totalorder %s162_s6, %s274_s7  ;;  %p280_p4 = scmp.lt.s32.totalorder %s274_s7, %s274_s7 }
  0x2c   :  { %195 = vmatpush3.bf16.msra.mxu0 %v222_v2  ;;  %p281_p5 = por %p280_p4, %p279_p3 }
  0x2d   :  { %196 = vmatprep.subr.bf16.mxu0 %v306_v0 }
  0x2e   :  { %p282_p6 = pnand %p281_p5, %p275_p2 }
  0x30   :  { %197 = vmatpush3.bf16.msra.mxu0 %v223_v3 }
  0x31   :  { %198 = vmatprep.subr.bf16.mxu0 %v306_v0 }
  0x34   :  { %199 = vmatpush3.bf16.msra.mxu0 %v224_v4 }
  0x35   :  { %200 = vmatprep.subr.bf16.mxu0 %v306_v0 }
  0x38   :  { %201 = vmatpush3.bf16.msra.mxu0 %v225_v5 }
  0x39   :  { %202 = vmatprep.subr.bf16.mxu0 %v306_v0 }
  0x3c   :  { %203 = vmatpush3.bf16.msra.mxu0 %v226_v6 }
  0x3d   :  { %204 = vmatprep.subr.bf16.mxu0 %v306_v0 }
  0x40   :  { %205 = vmatpush3.bf16.msra.mxu0 %v227_v7 }
  0x41   :  { %206 = vmatprep.subr.bf16.mxu0 %v306_v0 }
  0x44   :  { %207 = vmatpush3.bf16.msra.mxu0 %v228_v8 }
  0x47   :  { %209 = vmatmul.mubr.bf16.vlgmr.msra.gmra.mrb[0].mxu0 %v229_v9 }
 0x11a   :  { %v147_v10 = vpop.f32.mrb[0].mxu0 }
 0x11b   :  { %154 = vst [vmem:[#allocation7] sm:$0xff] %v147_v10  ;;  %v210_v11 = vpop.f32.mrb[1].mxu0 }
 0x11c   :  { %v150_v12 = vpop.f32.mrb[2].mxu0 }
 0x11d   :  { %155 = vst [vmem:[#allocation7 + $0x8] sm:$0xff] %v150_v12  ;;  %v211_v13 = vpop.f32.mrb[3].mxu0 }
 0x11e   :  { %285 = shalt.err (!%p282_p6)
}
 0x11f   :  { %s286_s10 = scalar_lea.hbm %s364_s2, 256 }
 0x120   :  { %p287_p7 = scmp.ne.s32.totalorder %s364_s2, %s286_s10  ;;  %p290_p8 = scmp.lt.u32.totalorder %s286_s10, %s364_s2 }
 0x122   :  { %p292_p9 = pnand %p290_p8, %p287_p7 }
 0x124   :  { %295 = shalt.err (!%p292_p9)
}
 0x125   :  { %s309_s15 = smov 128   ;;  %s310_s16 = smov 8  }
 0x126   :  { %167 = dma.vmem_to_hbm [thread:$0]  %s162_s6, 256, %s364_s2, [#allocation4], %s309_s15, %s309_s15, %s310_s16  }
 0x127   :  { %300 = dma.done.wait [#allocation4], 256  }
 0x128   :  { %301 = vsyncadd [#allocation4], 4294967040 }
 0x129   :  { %171 = vsyncpa [#allocation3], 1 }
 0x12a   :  { %172 = vsyncpa [#allocation6], 1 }
 0x12b   :  { %173 = vsyncpa [#allocation4], 1 }

</bundles_post_ra>
